<compile_context>
chip_gen: v7x
topology: tpu7x:2x2x1
jax: 0.10.0
libtpu: 0.0.40
codegen_flags: <defaults>
</compile_context>

<pallas_src>
import functools

import jax
import jax.numpy as jnp
from jax import lax
from jax.experimental import pallas as pl
from jax.experimental.pallas import tpu as pltpu

_LANE = 128
_SUB = 8
_RESIDENT_WEIGHT_BUDGET = 2 << 20   # bytes of layer weights kept resident in VMEM


# ---------------------------------------------------------------------------
# Device-adaptive knobs
# ---------------------------------------------------------------------------
def _device_kind():
    try:
        return jax.devices()[0].device_kind.lower()
    except Exception:
        return ""


def _device_tile_rows():
    k = _device_kind()
    if "v7" in k:
        return 4096      # 2 MiB f32 block; ~1.3 us DMA/step at 3.2 TB/s
    if "v6" in k or "trillium" in k:
        return 2048
    return 1024          # v5e / unknown: already near roofline


def _num_tensorcores():
    return 2 if "v7" in _device_kind() else 1


# ---------------------------------------------------------------------------
# Kernel body (fused MSE + L2)
# ---------------------------------------------------------------------------
def _ridge_kernel(*refs, rows_valid, tile_rows, blocks_per_split, inv_n,
                  alpha, n_weights, never_oob):
    p_ref, g_ref = refs[0], refs[1]
    w_refs = refs[2:2 + n_weights]
    o_ref = refs[2 + n_weights]
    acc_ref = refs[3 + n_weights]           # (8, 128) f32 scratch

    c = pl.program_id(0)                    # split (megacore) axis
    j = pl.program_id(1)                    # block axis (reduction, last)

    @pl.when(j == 0)
    def _():
        acc_ref[...] = jnp.zeros_like(acc_ref)

    d = p_ref[...].astype(jnp.float32) - g_ref[...].astype(jnp.float32)
    sq = d * d

    def _reduce_rows(x):
        # (tile,128) -> (tile//8, 8, 128): tile-aligned reshape, then pure VALU
        # vreg adds along axis 0 -> (8,128) partial sums (no XLU in the loop).
        return jnp.sum(x.reshape(tile_rows // _SUB, _SUB, _LANE), axis=0)

    if never_oob:
        acc_ref[...] += _reduce_rows(sq)
    else:
        row0 = (c * blocks_per_split + j) * tile_rows

        @pl.when(row0 + tile_rows <= rows_valid)
        def _():                                   # fully in-bounds block
            acc_ref[...] += _reduce_rows(sq)

        @pl.when(row0 + tile_rows > rows_valid)
        def _():                                   # ragged / duplicate block
            rid = lax.broadcasted_iota(jnp.int32, (tile_rows, _LANE), 0) + row0
            acc_ref[...] += _reduce_rows(jnp.where(rid < rows_valid, sq, 0.0))

    @pl.when(j == pl.num_programs(1) - 1)
    def _():
        o_ref[...] = (jnp.sum(acc_ref[...]) * inv_n).reshape(1, 1, 1)
        if n_weights:
            @pl.when(c == 0)        # add the L2 term exactly once
            def _():
                l2 = jnp.float32(0.0)
                for w_ref in w_refs:
                    w = w_ref[...].astype(jnp.float32)
                    l2 = l2 + jnp.sum(w * w)
                o_ref[...] = o_ref[...] + (jnp.float32(alpha) * l2).reshape(1, 1, 1)


# ---------------------------------------------------------------------------
# Launch glue
# ---------------------------------------------------------------------------
def _as_slab(x):
    """View x as a lane-dense (rows, 128) slab, rows a multiple of 8.
    Zero pad is sum-neutral for both (p-g)^2 and w^2; no dtype cast here."""
    flat = jnp.ravel(x)
    pad = (-flat.shape[0]) % (_LANE * _SUB)
    if pad:
        flat = jnp.pad(flat, (0, pad))
    return flat.reshape(-1, _LANE)


def _fused_ridge(p_slab, g_slab, w_slabs, *, n_elems, alpha, max_tile_rows=None):
    rows = p_slab.shape[0]
    tile_cap = max_tile_rows if max_tile_rows is not None else _device_tile_rows()
    tile_rows = min(rows, tile_cap)                    # multiple of 8
    blocks = pl.cdiv(rows, tile_rows)
    num_splits = 2 if (_num_tensorcores() >= 2 and blocks >= 8) else 1
    bps = pl.cdiv(blocks, num_splits)                  # blocks per split
    never_oob = (bps * num_splits == blocks) and (blocks * tile_rows == rows)

    def io_idx(c, j):
        b = c * bps + j
        return (jnp.minimum(b, blocks - 1), 0)         # clamp; kernel masks extras

    in_specs = [pl.BlockSpec((tile_rows, _LANE), io_idx),
                pl.BlockSpec((tile_rows, _LANE), io_idx)]
    for w in w_slabs:
        # Full-slab block with a constant index: DMA'd once, resident in VMEM.
        in_specs.append(pl.BlockSpec(w.shape, lambda c, j: (0, 0)))

    kern = functools.partial(
        _ridge_kernel, rows_valid=rows, tile_rows=tile_rows,
        blocks_per_split=bps, inv_n=1.0 / float(n_elems),
        alpha=float(alpha), n_weights=len(w_slabs), never_oob=never_oob)

    partials = pl.pallas_call(
        kern,
        out_shape=jax.ShapeDtypeStruct((num_splits, 1, 1), jnp.float32),
        grid_spec=pltpu.PrefetchScalarGridSpec(
            num_scalar_prefetch=0,
            grid=(num_splits, bps),
            in_specs=in_specs,
            out_specs=pl.BlockSpec((1, 1, 1), lambda c, j: (c, 0, 0)),
            scratch_shapes=[pltpu.VMEM((_SUB, _LANE), jnp.float32)],
        ),
        compiler_params=pltpu.CompilerParams(
            dimension_semantics=("parallel", "arbitrary")),
    )(p_slab, g_slab, *w_slabs)
    return jnp.sum(partials)


@functools.partial(jax.jit,
                   static_argnames=("alpha", "resident_budget_bytes",
                                    "max_tile_rows"))
def ridge_loss(pred, ground, layer_weights=(), *, alpha,
               resident_budget_bytes=_RESIDENT_WEIGHT_BUDGET,
               max_tile_rows=None):
    """loss = mean((pred - ground)^2) + alpha * sum_i sum(w_i^2)"""
    resident, fallback, used = [], [], 0
    for w in layer_weights:
        nbytes = int(w.size) * w.dtype.itemsize
        if used + nbytes <= resident_budget_bytes:
            resident.append(_as_slab(w))
            used += nbytes
        else:
            fallback.append(w)

    loss = _fused_ridge(_as_slab(pred), _as_slab(ground), resident,
                        n_elems=pred.size, alpha=alpha,
                        max_tile_rows=max_tile_rows)

    # Oversized weights: one XLA read+reduce each (mem-bound, ~roofline) rather
    # than forcing them resident in VMEM.
    for w in fallback:
        loss = loss + jnp.float32(alpha) * jnp.sum(jnp.square(w.astype(jnp.float32)))
    return loss


def ridge_loss_ref(pred, ground, layer_weights, *, alpha):
    loss = jnp.mean((pred.astype(jnp.float32) - ground.astype(jnp.float32)) ** 2)
    for w in layer_weights:
        loss = loss + jnp.float32(alpha) * jnp.sum(jnp.square(w.astype(jnp.float32)))
    return loss


# ---------------------------------------------------------------------------
# Main
# ---------------------------------------------------------------------------
if __name__ == "__main__":
    key = jax.random.PRNGKey(0)
    k_pred, k_ground, k_w1, k_w2, k_p3, k_g3, k_w3 = jax.random.split(key, 7)

    # Primary example: NCHW pred/ground + two Linear-layer weights (all fused
    # into one pallas_call: streamed pred/ground + resident weights).
    pred = jax.random.normal(k_pred, (2, 4, 16, 16), dtype=jnp.float32)
    ground = jax.random.normal(k_ground, (2, 4, 16, 16), dtype=jnp.float32)
    w1 = 0.1 * jax.random.normal(k_w1, (32, 64), dtype=jnp.float32)
    w2 = 0.1 * jax.random.normal(k_w2, (64, 16), dtype=jnp.float32)
    layer_weights = (w1, w2)
    alpha = 0.01

    loss = jax.block_until_ready(
        ridge_loss(pred, ground, layer_weights, alpha=alpha))
    ref = ridge_loss_ref(pred, ground, layer_weights, alpha=alpha)
    assert jnp.allclose(loss, ref, rtol=1e-4, atol=1e-6), (loss, ref)

    # Secondary self-check: force a small tile so the multi-block path with a
    # masked ragged boundary block runs, plus a weight whose numel % 128 != 0
    # (tail-padded slab).
    pred3 = jax.random.normal(k_p3, (2, 4, 96, 100), dtype=jnp.float32)
    ground3 = jax.random.normal(k_g3, (2, 4, 96, 100), dtype=jnp.float32)
    w3 = 0.1 * jax.random.normal(k_w3, (50, 30), dtype=jnp.float32)
    loss3 = jax.block_until_ready(
        ridge_loss(pred3, ground3, (w3,), alpha=alpha, max_tile_rows=64))
    ref3 = ridge_loss_ref(pred3, ground3, (w3,), alpha=alpha)
    assert jnp.allclose(loss3, ref3, rtol=1e-4, atol=1e-6), (loss3, ref3)

    # Third self-check: tiny residency budget -> weights take the XLA fallback
    # path while the MSE still runs through the Pallas kernel.
    loss4 = jax.block_until_ready(
        ridge_loss(pred, ground, layer_weights, alpha=alpha,
                   resident_budget_bytes=1024))
    assert jnp.allclose(loss4, ref, rtol=1e-4, atol=1e-6), (loss4, ref)

    print("KERNEL_OK")
</pallas_src>

<mosaic_0001>
module attributes {stable_mosaic.version = 11 : i64} {
  func.func @_ridge_kernel(%arg0: i32, %arg1: i32, %arg2: memref<16x128xf32, #tpu.memory_space<vmem>>, %arg3: memref<16x128xf32, #tpu.memory_space<vmem>>, %arg4: memref<16x128xf32, #tpu.memory_space<vmem>>, %arg5: memref<8x128xf32, #tpu.memory_space<vmem>>, %arg6: memref<1x1x1xf32, #tpu.memory_space<vmem>>, %arg7: memref<8x128xf32, #tpu.memory_space<vmem>>) attributes {dimension_semantics = [#tpu.dimension_semantics<parallel>, #tpu.dimension_semantics<arbitrary>], iteration_bounds = array<i64: 1, 1>, scalar_prefetch = 0 : i64, scratch_operands = 1 : i64, tpu.core_type = #tpu.core_type<tc>, window_params = [{transform_indices = @transform_0, window_bounds = array<i64: 16, 128>}, {transform_indices = @transform_1, window_bounds = array<i64: 16, 128>}, {pipeline_mode = #tpu.pipeline_mode<synchronous>, transform_indices = @transform_2, window_bounds = array<i64: 16, 128>}, {pipeline_mode = #tpu.pipeline_mode<synchronous>, transform_indices = @transform_3, window_bounds = array<i64: 8, 128>}, {transform_indices = @transform_4, window_bounds = array<i64: 1, 1, 1>}]} {
    %c0_i32 = arith.constant 0 : i32
    %0 = arith.cmpi eq, %arg1, %c0_i32 : i32
    %1 = arith.extui %0 : i1 to i32
    %c0_i32_0 = arith.constant 0 : i32
    %2 = arith.cmpi ne, %1, %c0_i32_0 : i32
    scf.if %2 {
      %cst_10 = arith.constant 0.000000e+00 : f32
      %15 = vector.broadcast %cst_10 : f32 to vector<8x128xf32>
      %c0_11 = arith.constant 0 : index
      %c0_12 = arith.constant 0 : index
      %16 = vector.load %arg7[%c0_11, %c0_12] : memref<8x128xf32, #tpu.memory_space<vmem>>, vector<8x128xf32>
      tpu.vector_store %arg7[%c0_11, %c0_12], %15 {strides = array<i32>} : memref<8x128xf32, #tpu.memory_space<vmem>>, vector<8x128xf32>,
    } else {
    }
    %c0 = arith.constant 0 : index
    %c0_1 = arith.constant 0 : index
    %3 = vector.load %arg2[%c0, %c0_1] : memref<16x128xf32, #tpu.memory_space<vmem>>, vector<16x128xf32>
    %c0_2 = arith.constant 0 : index
    %c0_3 = arith.constant 0 : index
    %4 = vector.load %arg3[%c0_2, %c0_3] : memref<16x128xf32, #tpu.memory_space<vmem>>, vector<16x128xf32>
    %5 = arith.subf %3, %4 : vector<16x128xf32>
    %6 = arith.mulf %5, %5 : vector<16x128xf32>
    %c0_4 = arith.constant 0 : index
    %c0_5 = arith.constant 0 : index
    %7 = vector.load %arg7[%c0_4, %c0_5] : memref<8x128xf32, #tpu.memory_space<vmem>>, vector<8x128xf32>
    %8 = vector.shape_cast %6 : vector<16x128xf32> to vector<2x8x128xf32>
    %cst = arith.constant dense<0.000000e+00> : vector<8x128xf32>
    %9 = vector.multi_reduction <add>, %8, %cst [0] : vector<2x8x128xf32> to vector<8x128xf32>
    %10 = arith.addf %7, %9 : vector<8x128xf32>
    %c0_6 = arith.constant 0 : index
    %c0_7 = arith.constant 0 : index
    %11 = vector.load %arg7[%c0_6, %c0_7] : memref<8x128xf32, #tpu.memory_space<vmem>>, vector<8x128xf32>
    tpu.vector_store %arg7[%c0_6, %c0_7], %10 {strides = array<i32>} : memref<8x128xf32, #tpu.memory_space<vmem>>, vector<8x128xf32>,
    %c0_i32_8 = arith.constant 0 : i32
    %12 = arith.cmpi eq, %arg1, %c0_i32_8 : i32
    %13 = arith.extui %12 : i1 to i32
    %c0_i32_9 = arith.constant 0 : i32
    %14 = arith.cmpi ne, %13, %c0_i32_9 : i32
    scf.if %14 {
      %c0_10 = arith.constant 0 : index
      %c0_11 = arith.constant 0 : index
      %15 = vector.load %arg7[%c0_10, %c0_11] : memref<8x128xf32, #tpu.memory_space<vmem>>, vector<8x128xf32>
      %16 = vector.shape_cast %15 : vector<8x128xf32> to vector<1x8x128xf32>
      %cst_12 = arith.constant dense<0.000000e+00> : vector<1xf32>
      %17 = vector.multi_reduction <add>, %16, %cst_12 [1, 2] : vector<1x8x128xf32> to vector<1xf32>
      %18 = vector.shape_cast %17 : vector<1xf32> to vector<1x1x1xf32>
      %19 = vector.extract %18[0, 0, 0] : f32 from vector<1x1x1xf32>
      %cst_13 = arith.constant 4.8828125E-4 : f32
      %20 = arith.mulf %19, %cst_13 : f32
      %21 = vector.broadcast %20 : f32 to vector<1x1x1xf32>
      %c0_14 = arith.constant 0 : index
      %c0_15 = arith.constant 0 : index
      %c0_16 = arith.constant 0 : index
      %22 = vector.load %arg6[%c0_14, %c0_15, %c0_16] : memref<1x1x1xf32, #tpu.memory_space<vmem>>, vector<1x1x1xf32>
      tpu.vector_store %arg6[%c0_14, %c0_15, %c0_16], %21 {strides = array<i32>} : memref<1x1x1xf32, #tpu.memory_space<vmem>>, vector<1x1x1xf32>,
      %c0_i32_17 = arith.constant 0 : i32
      %23 = arith.cmpi eq, %arg0, %c0_i32_17 : i32
      %24 = arith.extui %23 : i1 to i32
      %c0_i32_18 = arith.constant 0 : i32
      %25 = arith.cmpi ne, %24, %c0_i32_18 : i32
      scf.if %25 {
        %c0_19 = arith.constant 0 : index
        %c0_20 = arith.constant 0 : index
        %26 = vector.load %arg4[%c0_19, %c0_20] : memref<16x128xf32, #tpu.memory_space<vmem>>, vector<16x128xf32>
        %27 = arith.mulf %26, %26 : vector<16x128xf32>
        %28 = vector.shape_cast %27 : vector<16x128xf32> to vector<1x16x128xf32>
        %cst_21 = arith.constant dense<0.000000e+00> : vector<1xf32>
        %29 = vector.multi_reduction <add>, %28, %cst_21 [1, 2] : vector<1x16x128xf32> to vector<1xf32>
        %30 = vector.shape_cast %29 : vector<1xf32> to vector<1x1x1xf32>
        %31 = vector.extract %30[0, 0, 0] : f32 from vector<1x1x1xf32>
        %cst_22 = arith.constant 0.000000e+00 : f32
        %32 = arith.addf %cst_22, %31 : f32
        %c0_23 = arith.constant 0 : index
        %c0_24 = arith.constant 0 : index
        %33 = vector.load %arg5[%c0_23, %c0_24] : memref<8x128xf32, #tpu.memory_space<vmem>>, vector<8x128xf32>
        %34 = arith.mulf %33, %33 : vector<8x128xf32>
        %35 = vector.shape_cast %34 : vector<8x128xf32> to vector<1x8x128xf32>
        %cst_25 = arith.constant dense<0.000000e+00> : vector<1xf32>
        %36 = vector.multi_reduction <add>, %35, %cst_25 [1, 2] : vector<1x8x128xf32> to vector<1xf32>
        %37 = vector.shape_cast %36 : vector<1xf32> to vector<1x1x1xf32>
        %38 = vector.extract %37[0, 0, 0] : f32 from vector<1x1x1xf32>
        %39 = arith.addf %32, %38 : f32
        %c0_26 = arith.constant 0 : index
        %c0_27 = arith.constant 0 : index
        %c0_28 = arith.constant 0 : index
        %40 = vector.load %arg6[%c0_26, %c0_27, %c0_28] : memref<1x1x1xf32, #tpu.memory_space<vmem>>, vector<1x1x1xf32>
        %cst_29 = arith.constant 0.00999999977 : f32
        %41 = arith.mulf %cst_29, %39 : f32
        %42 = vector.broadcast %41 : f32 to vector<1x1x1xf32>
        %43 = arith.addf %40, %42 : vector<1x1x1xf32>
        %c0_30 = arith.constant 0 : index
        %c0_31 = arith.constant 0 : index
        %c0_32 = arith.constant 0 : index
        %44 = vector.load %arg6[%c0_30, %c0_31, %c0_32] : memref<1x1x1xf32, #tpu.memory_space<vmem>>, vector<1x1x1xf32>
        tpu.vector_store %arg6[%c0_30, %c0_31, %c0_32], %43 {strides = array<i32>} : memref<1x1x1xf32, #tpu.memory_space<vmem>>, vector<1x1x1xf32>,
      } else {
      }
    } else {
    }
    return
  }
  func.func @transform_0(%arg0: i32, %arg1: i32) -> (i32, i32) {
    %c1_i32 = arith.constant 1 : i32
    %0 = arith.muli %arg0, %c1_i32 : i32
    %1 = arith.addi %0, %arg1 : i32
    %c0_i32 = arith.constant 0 : i32
    %2 = arith.minsi %1, %c0_i32 : i32
    %c0_i32_0 = arith.constant 0 : i32
    %c0_i32_1 = arith.constant 0 : i32
    return %2, %c0_i32_0 : i32, i32
  }
  func.func @transform_1(%arg0: i32, %arg1: i32) -> (i32, i32) {
    %c1_i32 = arith.constant 1 : i32
    %0 = arith.muli %arg0, %c1_i32 : i32
    %1 = arith.addi %0, %arg1 : i32
    %c0_i32 = arith.constant 0 : i32
    %2 = arith.minsi %1, %c0_i32 : i32
    %c0_i32_0 = arith.constant 0 : i32
    %c0_i32_1 = arith.constant 0 : i32
    return %2, %c0_i32_0 : i32, i32
  }
  func.func @transform_2(%arg0: i32, %arg1: i32) -> (i32, i32) {
    %c0_i32 = arith.constant 0 : i32
    %c0_i32_0 = arith.constant 0 : i32
    %c0_i32_1 = arith.constant 0 : i32
    return %c0_i32, %c0_i32_0 : i32, i32
  }
  func.func @transform_3(%arg0: i32, %arg1: i32) -> (i32, i32) {
    %c0_i32 = arith.constant 0 : i32
    %c0_i32_0 = arith.constant 0 : i32
    %c0_i32_1 = arith.constant 0 : i32
    return %c0_i32, %c0_i32_0 : i32, i32
  }
  func.func @transform_4(%arg0: i32, %arg1: i32) -> (i32, i32, i32) {
    %c0_i32 = arith.constant 0 : i32
    %c0_i32_0 = arith.constant 0 : i32
    %c0_i32_1 = arith.constant 0 : i32
    return %arg0, %c0_i32, %c0_i32_0 : i32, i32, i32
  }
}

</mosaic_0001>

<bundles_post_ra>
// kernel: ridge_loss.1
= control target key start
LH: loop header
LB: loop body
LE: loop exit
PB: predicated region body
PF: predicated region fallthrough
CT: control target
= control target key end

     0   :  { %s268_s0 = inlined_call_operand.vmem [shape: f32[16,128], index: 0, kind: input, shape index: {}]   ;;  %s269_s1 = inlined_call_operand.vmem [shape: f32[16,128], index: 1, kind: input, shape index: {}]   ;;  %s270_s2 = inlined_call_operand.vmem [shape: f32[16,128], index: 2, kind: input, shape index: {}]   ;;  %s271_s3 = inlined_call_operand.vmem [shape: f32[8,128], index: 3, kind: input, shape index: {}]   ;;  %s272_s4 = inlined_call_operand.hbm [shape: f32[1,1,1], index: 4, kind: output, shape index: {}]  }
   0x1   :  { %v135_v0 = vld [vmem:[%s271_s3] sm:$0xff]  ;;  %v88_v2 = vld [vmem:[%s268_s0 + $0x8] sm:$0xff] }
   0x2   :  { %v87_v1 = vld [vmem:[%s268_s0] sm:$0xff]  ;;  %v136_v3 = vmul.f32 %v135_v0, %v135_v0  ;;  %v90_v5 = vld [vmem:[%s269_s1 + $0x8] sm:$0xff] }
   0x3   :  { %v89_v4 = vld [vmem:[%s269_s1] sm:$0xff]  ;;  %v92_v8 = vsub.f32 %v88_v2, %v90_v5  ;;  %v121_v9 = vld [vmem:[%s270_s2 + $0x8] sm:$0xff] }
   0x4   :  { %v120_v6 = vld [vmem:[%s270_s2] sm:$0xff]  ;;  %v91_v7 = vsub.f32 %v87_v1, %v89_v4 }
   0x5   :  { %9 = vsyncpa [#allocation4], 0  ;;  %137 = vadd.xlane.f32.xlu1 %v136_v3  ;;  %v94_v11 = vmul.f32 %v92_v8, %v92_v8  ;;  %v122_v12 = vmul.f32 %v120_v6, %v120_v6  ;;  %v123_v13 = vmul.f32 %v121_v9, %v121_v9  ;;  %vm114_vm0 = vcmask 0   ;;  %s209_s5 = smov [#allocation3]  }
   0x6   :  { %v93_v10 = vmul.f32 %v91_v7, %v91_v7  ;;  %s158_s6 = sshll.u32 %s209_s5, 4  ;;  %s159_s6 = int_to_ptr.vmem [resolvable:$true] %s158_s6 }
   0x7   :  { %v124_v15 = vadd.f32 %v123_v13, %v122_v12  ;;  %s185_s7 = scalar_lea.vmem %s159_s6, 16  ;;  %s189_s8 = scalar_lea.vmem %s159_s6, 32 }
   0x8   :  { %v96_v14 = vadd.f32 %v94_v11, %v93_v10  ;;  %p186_p0 = scmp.ne.s32.totalorder %s159_s6, %s185_s7  ;;  %p190_p1 = scmp.lt.s32.totalorder %s159_s6, %s159_s6 }
   0x9   :  { %p191_p2 = scmp.lt.s32.totalorder %s189_s8, %s185_s7 }
   0xa   :  { %103 = vadd.xlane.f32.xlu0 %v96_v14 }
   0xb   :  { %p192_p3 = por %p191_p2, %p190_p1 }
   0xd   :  { %p193_p4 = pnand %p192_p3, %p186_p0 }
   0xe   :  { %125 = vadd.xlane.f32.xlu0 %v124_v15 }
  0x92   :  { %v138_v16 = vpop.xlane.xlu1 %137 }
  0x93   :  { %v139_v17 = vrot.slane %v138_v16, 4 }
  0x95   :  { %v140_v18 = vadd.f32 %v139_v17, %v138_v16 }
  0x97   :  { %v104_v19 = vpop.xlane.xlu0 %103  ;;  %v141_v22 = vrot.slane %v140_v18, 2 }
  0x98   :  { %v105_v20 = vrot.slane %v104_v19, 4 }
  0x99   :  { %v142_v28 = vadd.f32 %v141_v22, %v140_v18 }
  0x9a   :  { %v106_v21 = vadd.f32 %v105_v20, %v104_v19 }
  0x9b   :  { %v126_v23 = vpop.xlane.xlu0 %125  ;;  %v143_v33 = vrot.slane %v142_v28, 1 }
  0x9c   :  { %v107_v24 = vrot.slane %v106_v21, 2  ;;  %v127_v25 = vrot.slane %v126_v23, 4 }
  0x9d   :  { %v144_v36 = vadd.f32 %v143_v33, %v142_v28 }
  0x9e   :  { %v128_v26 = vadd.f32 %v127_v25, %v126_v23  ;;  %v108_v27 = vadd.f32 %v107_v24, %v106_v21 }
  0xa0   :  { %v129_v29 = vrot.slane %v128_v26, 2  ;;  %v109_v30 = vrot.slane %v108_v27, 1 }
  0xa2   :  { %v130_v31 = vadd.f32 %v129_v29, %v128_v26  ;;  %v110_v32 = vadd.f32 %v109_v30, %v108_v27 }
  0xa4   :  { %178 = vpush %v110_v32  ;;  %v131_v34 = vrot.slane %v130_v31, 1 }
  0xa6   :  { %v132_v35 = vadd.f32 %v131_v34, %v130_v31 }
  0xa8   :  { %180 = vpush %v132_v35 }
  0xa9   :  { %182 = vpush %v144_v36 }
  0xd5   :  { %s179_s0 = spop %178 }
  0xd6   :  { %s112_s1 = smul.f32 0.00048828125, %s179_s0 }
  0xd8   :  { %v113_v37 = vstv %s112_s1 }
  0xd9   :  { %115 = vst.msk [vmem:[#allocation3] sm:$0x1] %vm114_vm0, %v113_v37  ;;  %s181_s2 = spop %180 }
  0xda   :  { %s183_s28 = spop %182 }
  0xdb   :  { %s146_s29 = sadd.f32 %s183_s28, %s181_s2 }
  0xdd   :  { %s148_s30 = smul.f32 0.01, %s146_s29 }
  0xdf   :  { %v149_v39 = vstv %s148_s30 }
  0xe0   :  { %v147_v38 = vld [vmem:[#allocation3] sm:$0x1] }
  0xe1   :  { %v150_v40 = vadd.f32 %v149_v39, %v147_v38 }
  0xe3   :  { %151 = vst.msk [vmem:[#allocation3] sm:$0x1] %vm114_vm0, %v150_v40 }
  0xe4   :  { %196 = shalt.err (!%p193_p4)
}
  0xe5   :  { %s197_s11 = scalar_lea.hbm %s272_s4, 16 }
  0xe6   :  { %p198_p5 = scmp.ne.s32.totalorder %s272_s4, %s197_s11  ;;  %p201_p6 = scmp.lt.u32.totalorder %s197_s11, %s272_s4 }
  0xe8   :  { %p203_p7 = pnand %p201_p6, %p198_p5 }
  0xea   :  { %206 = shalt.err (!%p203_p7)
}
  0xeb   :  { %161 = dma.vmem_to_hbm [thread:$0]  %s159_s6, 16, %s272_s4, [#allocation4]  }
  0xec   :  { %207 = dma.done.wait [#allocation4], 16  }
  0xed   :  { %208 = vsyncadd [#allocation4], 4294967280 }
  0xee   :  { %165 = vsyncpa [#allocation4], 1 }

</bundles_post_ra>
